<compile_context>
chip_gen: v6e
topology: v6e:2x2x1
jax: 0.10.0
libtpu: 0.0.40
codegen_flags: <defaults>
</compile_context>

<pallas_src>
import jax
import jax.numpy as jnp
from jax.experimental import pallas as pl
from jax.experimental.pallas import tpu as pltpu

NUM_CLASSES = 10
IGNORE_INDEX = 0


def _round_up(x, m):
    return (x + m - 1) // m * m


def _cdiv(a, b):
    return -(-a // b)


def weighted_ce_loss(logits_nchw, targets, class_weights, *,
                     ignore_index=IGNORE_INDEX, tile_hw=32768, n_chunks=2):
    """nn.CrossEntropyLoss(weight=class_weights, ignore_index=ignore_index)
    ('mean' reduction) on NCHW logits / NHW integer targets."""
    N, C, H, W = logits_nchw.shape
    HW = H * W
    assert class_weights.shape[0] == C

    # Free reshapes only — nothing materialized in HBM.
    x = logits_nchw.reshape(N, C, HW)            # classes on sublanes, pixels lane-dense
    t = targets.reshape(N, 1, HW)                # native dtype, upcast in-kernel

    # Fold ignore_index into the class weights: ignored pixels contribute 0 to
    # both numerator and denominator (matches torch semantics exactly).
    w_eff = class_weights.astype(jnp.float32)
    w_eff = w_eff.at[ignore_index].set(0.0).reshape(C, 1)

    # Pixel tiling (multiple of 128 lanes). No HBM padding — ragged tail and
    # clamped duplicate blocks are masked in-kernel.
    tile = _round_up(min(tile_hw, _round_up(HW, 128)), 128)
    total_tiles = _cdiv(HW, tile)
    nch = max(1, min(n_chunks, total_tiles))     # parallel pixel-chunk axis (v7x)
    n_tiles = _cdiv(total_tiles, nch)
    last_block = total_tiles - 1

    def hw_block(c, ti):
        # Clamp so a (chunk, tile) step past the end re-reads the last valid
        # block instead of DMA-ing out of bounds; its lanes are masked anyway.
        return jnp.minimum(c * n_tiles + ti, last_block)

    def kernel(logits_ref, tgt_ref, w_ref, out_ref, num_acc, den_acc):
        ti = pl.program_id(2)

        @pl.when(ti == 0)
        def _():
            num_acc[...] = jnp.zeros_like(num_acc)
            den_acc[...] = jnp.zeros_like(den_acc)

        xb = logits_ref[0].astype(jnp.float32)            # (C, T) f32
        tg = tgt_ref[0].astype(jnp.int32)                 # (1, T)

        # log-sum-exp over the class (sublane) axis — XLU + EUP work.
        m = jnp.max(xb, axis=0, keepdims=True)            # (1, T)
        lse = jnp.log(jnp.sum(jnp.exp(xb - m), axis=0, keepdims=True)) + m

        # Fused one-hot * weight select (ignore already folded into w_eff).
        cls = jax.lax.broadcasted_iota(jnp.int32, xb.shape, 0)       # (C, T)
        w_oh = jnp.where(cls == tg, w_ref[...], 0.0)                 # (C, T)
        w_t = jnp.sum(w_oh, axis=0, keepdims=True)        # w_eff[target]        (1, T)
        x_w = jnp.sum(w_oh * xb, axis=0, keepdims=True)   # w_eff[target]*x[tgt] (1, T)

        # Lane validity for the ragged tail / clamped out-of-range blocks.
        # (jnp.where is a select, so garbage lanes cannot leak NaN/Inf.)
        base = (pl.program_id(1) * n_tiles + ti) * tile
        lane = jax.lax.broadcasted_iota(jnp.int32, (1, tile), 1)
        valid = (lane + base) < HW                                    # (1, T)

        # Lane-parallel partial sums (plain VPU adds); cross-lane reduce is
        # deferred to the per-(batch, chunk) epilogue.
        num_acc[...] += jnp.where(valid, w_t * lse - x_w, 0.0)
        den_acc[...] += jnp.where(valid, w_t, 0.0)

        @pl.when(ti == pl.num_programs(2) - 1)
        def _():
            num = jnp.sum(num_acc[...])
            den = jnp.sum(den_acc[...])
            sub = jax.lax.broadcasted_iota(jnp.int32, out_ref.shape, 2)
            out_ref[...] = jnp.where(sub == 0, num,
                                     jnp.where(sub == 1, den, 0.0))

    out = pl.pallas_call(
        kernel,
        out_shape=jax.ShapeDtypeStruct((N, nch, 8, 128), jnp.float32),
        grid_spec=pltpu.PrefetchScalarGridSpec(
            num_scalar_prefetch=0,
            grid=(N, nch, n_tiles),
            in_specs=[
                pl.BlockSpec((1, C, tile),
                             lambda n, c, ti: (n, 0, hw_block(c, ti))),   # logits
                pl.BlockSpec((1, 1, tile),
                             lambda n, c, ti: (n, 0, hw_block(c, ti))),   # targets
                pl.BlockSpec((C, 1), lambda n, c, ti: (0, 0)),            # weights
            ],
            out_specs=pl.BlockSpec((1, 1, 8, 128), lambda n, c, ti: (n, c, 0, 0)),
            scratch_shapes=[pltpu.VMEM((1, tile), jnp.float32),
                            pltpu.VMEM((1, tile), jnp.float32)],
        ),
        compiler_params=pltpu.CompilerParams(
            dimension_semantics=("parallel", "parallel", "arbitrary"),
            vmem_limit_bytes=32 * 1024 * 1024),
    )(x, t, w_eff)

    # torch weighted CE ('mean'): sum(w[t_i]*nll_i) / sum(w[t_i]) over
    # non-ignored i.  (All-ignored input gives 0/0 = NaN, matching torch.)
    num = jnp.sum(out[:, :, 0, 0])
    den = jnp.sum(out[:, :, 1, 0])
    return num / den


class AggregatorLossPallas:
    """Pallas port of AggregatorLoss (plain weighted-CE aggregation path)."""
    # TODO(synk): selectExpertLoss / CELoss_2experts / CELoss_3experts are not
    # defined in the reference source; only the weighted-CE aggregation branch
    # (finetune_classifier_only=True, non-"select" aggregation) is implemented.

    def __init__(self, class_weights, ignore_index=IGNORE_INDEX):
        self.class_weights = class_weights
        self.ignore_index = ignore_index

    def __call__(self, output, targets):
        return weighted_ce_loss(output["aggregation"], targets,
                                self.class_weights,
                                ignore_index=self.ignore_index)


def _reference_loss(logits_nchw, targets, weights, ignore_index=IGNORE_INDEX):
    """Pure-JAX reference matching torch.nn.CrossEntropyLoss semantics."""
    N, C, H, W = logits_nchw.shape
    x = jnp.transpose(logits_nchw, (0, 2, 3, 1)).reshape(-1, C).astype(jnp.float32)
    t = targets.reshape(-1)
    logp = jax.nn.log_softmax(x, axis=-1)
    nll = -jnp.take_along_axis(logp, t[:, None], axis=-1)[:, 0]
    w = weights.astype(jnp.float32)[t]
    valid = t != ignore_index
    num = jnp.sum(jnp.where(valid, nll * w, 0.0))
    den = jnp.sum(jnp.where(valid, w, 0.0))
    return num / den


if __name__ == "__main__":
    key = jax.random.PRNGKey(0)
    k1, k2, k3, k4 = jax.random.split(key, 4)

    # Deterministic "CBL" class weights from the module's __init__.
    cbl_weights = jnp.array(
        [0.0, 0.001, 0.005, 0.01, 0.1, 0.001, 0.002, 0.003, 0.001, 0.001],
        dtype=jnp.float32)

    # --- Test 1: small NCHW, f32 logits, CBL weights, single tile ---
    N, C, H, W = 2, NUM_CLASSES, 16, 16
    logits = jax.random.normal(k1, (N, C, H, W), dtype=jnp.float32)
    targets = jax.random.randint(k2, (N, H, W), 0, NUM_CLASSES, dtype=jnp.int32)

    loss_mod = AggregatorLossPallas(cbl_weights)
    loss = jax.block_until_ready(loss_mod({"aggregation": logits}, targets))
    ref = jax.block_until_ready(_reference_loss(logits, targets, cbl_weights))
    assert jnp.allclose(loss, ref, rtol=1e-5, atol=1e-5), (loss, ref)

    # --- Test 2: bf16 logits fed straight in (kernel upcasts) ---
    logits_bf16 = logits.astype(jnp.bfloat16)
    loss_bf = jax.block_until_ready(
        weighted_ce_loss(logits_bf16, targets, cbl_weights))
    ref_bf = jax.block_until_ready(
        _reference_loss(logits_bf16, targets, cbl_weights))
    assert jnp.allclose(loss_bf, ref_bf, rtol=1e-4, atol=1e-4), (loss_bf, ref_bf)

    # --- Test 3: ragged spatial size + multi-tile + 2 parallel pixel chunks
    #            (exercises tail masking and clamped out-of-range blocks) ---
    N2, H2, W2 = 1, 13, 21                      # HW = 273, not a multiple of 128
    ones_w = jnp.ones((NUM_CLASSES,), dtype=jnp.float32)
    logits2 = jax.random.normal(k3, (N2, NUM_CLASSES, H2, W2), dtype=jnp.float32)
    targets2 = jax.random.randint(k4, (N2, H2, W2), 0, NUM_CLASSES, dtype=jnp.int32)

    loss2 = jax.block_until_ready(
        weighted_ce_loss(logits2, targets2, ones_w, tile_hw=128))
    ref2 = jax.block_until_ready(_reference_loss(logits2, targets2, ones_w))
    assert jnp.allclose(loss2, ref2, rtol=1e-5, atol=1e-5), (loss2, ref2)

    print("KERNEL_OK")
</pallas_src>

<mosaic_0001>
module attributes {stable_mosaic.version = 11 : i64} {
  func.func @kernel(%arg0: i32, %arg1: i32, %arg2: i32, %arg3: memref<1x10x256xf32, #tpu.memory_space<vmem>>, %arg4: memref<1x1x256xi32, #tpu.memory_space<vmem>>, %arg5: memref<10x1xf32, #tpu.memory_space<vmem>>, %arg6: memref<1x1x8x128xf32, #tpu.memory_space<vmem>>, %arg7: memref<1x256xf32, #tpu.memory_space<vmem>>, %arg8: memref<1x256xf32, #tpu.memory_space<vmem>>) attributes {dimension_semantics = [#tpu.dimension_semantics<parallel>, #tpu.dimension_semantics<parallel>, #tpu.dimension_semantics<arbitrary>], iteration_bounds = array<i64: 2, 1, 1>, scalar_prefetch = 0 : i64, scratch_operands = 2 : i64, tpu.core_type = #tpu.core_type<tc>, window_params = [{transform_indices = @transform_0, window_bounds = array<i64: 1, 10, 256>}, {transform_indices = @transform_1, window_bounds = array<i64: 1, 1, 256>}, {pipeline_mode = #tpu.pipeline_mode<synchronous>, transform_indices = @transform_2, window_bounds = array<i64: 10, 1>}, {transform_indices = @transform_3, window_bounds = array<i64: 1, 1, 8, 128>}]} {
    %c0_i32 = arith.constant 0 : i32
    %0 = arith.cmpi eq, %arg2, %c0_i32 : i32
    %1 = arith.extui %0 : i1 to i32
    %c0_i32_0 = arith.constant 0 : i32
    %2 = arith.cmpi ne, %1, %c0_i32_0 : i32
    scf.if %2 {
      %cst_25 = arith.constant 0.000000e+00 : f32
      %52 = vector.broadcast %cst_25 : f32 to vector<1x256xf32>
      %c0_26 = arith.constant 0 : index
      %c0_27 = arith.constant 0 : index
      %53 = vector.load %arg7[%c0_26, %c0_27] : memref<1x256xf32, #tpu.memory_space<vmem>>, vector<1x256xf32>
      tpu.vector_store %arg7[%c0_26, %c0_27], %52 {strides = array<i32>} : memref<1x256xf32, #tpu.memory_space<vmem>>, vector<1x256xf32>,
      %cst_28 = arith.constant 0.000000e+00 : f32
      %54 = vector.broadcast %cst_28 : f32 to vector<1x256xf32>
      %c0_29 = arith.constant 0 : index
      %c0_30 = arith.constant 0 : index
      %55 = vector.load %arg8[%c0_29, %c0_30] : memref<1x256xf32, #tpu.memory_space<vmem>>, vector<1x256xf32>
      tpu.vector_store %arg8[%c0_29, %c0_30], %54 {strides = array<i32>} : memref<1x256xf32, #tpu.memory_space<vmem>>, vector<1x256xf32>,
    } else {
    }
    %c0 = arith.constant 0 : index
    %c0_1 = arith.constant 0 : index
    %c0_2 = arith.constant 0 : index
    %3 = vector.load %arg3[%c0, %c0_1, %c0_2] : memref<1x10x256xf32, #tpu.memory_space<vmem>>, vector<1x10x256xf32>
    %4 = vector.shape_cast %3 : vector<1x10x256xf32> to vector<10x256xf32>
    %c0_3 = arith.constant 0 : index
    %c0_4 = arith.constant 0 : index
    %c0_5 = arith.constant 0 : index
    %5 = vector.load %arg4[%c0_3, %c0_4, %c0_5] : memref<1x1x256xi32, #tpu.memory_space<vmem>>, vector<1x1x256xi32>
    %6 = vector.shape_cast %5 : vector<1x1x256xi32> to vector<1x256xi32>
    %cst = arith.constant dense<0xFF800000> : vector<256xf32>
    %7 = vector.multi_reduction <maximumf>, %4, %cst [0] : vector<10x256xf32> to vector<256xf32>
    %8 = vector.shape_cast %7 : vector<256xf32> to vector<1x256xf32>
    %9 = vector.broadcast %8 : vector<1x256xf32> to vector<10x256xf32>
    %10 = arith.subf %4, %9 : vector<10x256xf32>
    %11 = math.exp %10 : vector<10x256xf32>
    %cst_6 = arith.constant dense<0.000000e+00> : vector<256xf32>
    %12 = vector.multi_reduction <add>, %11, %cst_6 [0] : vector<10x256xf32> to vector<256xf32>
    %13 = vector.shape_cast %12 : vector<256xf32> to vector<1x256xf32>
    %14 = math.log %13 : vector<1x256xf32>
    %15 = arith.addf %14, %8 : vector<1x256xf32>
    %16 = tpu.iota {dimensions = array<i32: 0>} : vector<10x256xi32>
    %17 = vector.broadcast %6 : vector<1x256xi32> to vector<10x256xi32>
    %18 = arith.cmpi eq, %16, %17 : vector<10x256xi32>
    %c0_7 = arith.constant 0 : index
    %c0_8 = arith.constant 0 : index
    %19 = vector.load %arg5[%c0_7, %c0_8] : memref<10x1xf32, #tpu.memory_space<vmem>>, vector<10x1xf32>
    %cst_9 = arith.constant 0.000000e+00 : f32
    %20 = vector.shape_cast %19 : vector<10x1xf32> to vector<10x1xf32>
    %21 = vector.broadcast %20 : vector<10x1xf32> to vector<10x256xf32>
    %22 = vector.broadcast %cst_9 : f32 to vector<10x256xf32>
    %23 = arith.select %18, %21, %22 : vector<10x256xi1>, vector<10x256xf32>
    %cst_10 = arith.constant dense<0.000000e+00> : vector<256xf32>
    %24 = vector.multi_reduction <add>, %23, %cst_10 [0] : vector<10x256xf32> to vector<256xf32>
    %25 = vector.shape_cast %24 : vector<256xf32> to vector<1x256xf32>
    %26 = arith.mulf %23, %4 : vector<10x256xf32>
    %cst_11 = arith.constant dense<0.000000e+00> : vector<256xf32>
    %27 = vector.multi_reduction <add>, %26, %cst_11 [0] : vector<10x256xf32> to vector<256xf32>
    %28 = vector.shape_cast %27 : vector<256xf32> to vector<1x256xf32>
    %c1_i32 = arith.constant 1 : i32
    %29 = arith.muli %arg1, %c1_i32 : i32
    %30 = arith.addi %29, %arg2 : i32
    %c256_i32 = arith.constant 256 : i32
    %31 = arith.muli %30, %c256_i32 : i32
    %32 = tpu.iota {dimensions = array<i32: 1>} : vector<1x256xi32>
    %33 = vector.broadcast %31 : i32 to vector<1x256xi32>
    %34 = arith.addi %32, %33 : vector<1x256xi32>
    %c256_i32_12 = arith.constant 256 : i32
    %35 = vector.broadcast %c256_i32_12 : i32 to vector<1x256xi32>
    %36 = arith.cmpi slt, %34, %35 : vector<1x256xi32>
    %c0_13 = arith.constant 0 : index
    %c0_14 = arith.constant 0 : index
    %37 = vector.load %arg7[%c0_13, %c0_14] : memref<1x256xf32, #tpu.memory_space<vmem>>, vector<1x256xf32>
    %38 = arith.mulf %25, %15 : vector<1x256xf32>
    %39 = arith.subf %38, %28 : vector<1x256xf32>
    %cst_15 = arith.constant 0.000000e+00 : f32
    %40 = vector.broadcast %cst_15 : f32 to vector<1x256xf32>
    %41 = arith.select %36, %39, %40 : vector<1x256xi1>, vector<1x256xf32>
    %42 = arith.addf %37, %41 : vector<1x256xf32>
    %c0_16 = arith.constant 0 : index
    %c0_17 = arith.constant 0 : index
    %43 = vector.load %arg7[%c0_16, %c0_17] : memref<1x256xf32, #tpu.memory_space<vmem>>, vector<1x256xf32>
    tpu.vector_store %arg7[%c0_16, %c0_17], %42 {strides = array<i32>} : memref<1x256xf32, #tpu.memory_space<vmem>>, vector<1x256xf32>,
    %c0_18 = arith.constant 0 : index
    %c0_19 = arith.constant 0 : index
    %44 = vector.load %arg8[%c0_18, %c0_19] : memref<1x256xf32, #tpu.memory_space<vmem>>, vector<1x256xf32>
    %cst_20 = arith.constant 0.000000e+00 : f32
    %45 = vector.broadcast %cst_20 : f32 to vector<1x256xf32>
    %46 = arith.select %36, %25, %45 : vector<1x256xi1>, vector<1x256xf32>
    %47 = arith.addf %44, %46 : vector<1x256xf32>
    %c0_21 = arith.constant 0 : index
    %c0_22 = arith.constant 0 : index
    %48 = vector.load %arg8[%c0_21, %c0_22] : memref<1x256xf32, #tpu.memory_space<vmem>>, vector<1x256xf32>
    tpu.vector_store %arg8[%c0_21, %c0_22], %47 {strides = array<i32>} : memref<1x256xf32, #tpu.memory_space<vmem>>, vector<1x256xf32>,
    %c0_i32_23 = arith.constant 0 : i32
    %49 = arith.cmpi eq, %arg2, %c0_i32_23 : i32
    %50 = arith.extui %49 : i1 to i32
    %c0_i32_24 = arith.constant 0 : i32
    %51 = arith.cmpi ne, %50, %c0_i32_24 : i32
    scf.if %51 {
      %c0_25 = arith.constant 0 : index
      %c0_26 = arith.constant 0 : index
      %52 = vector.load %arg7[%c0_25, %c0_26] : memref<1x256xf32, #tpu.memory_space<vmem>>, vector<1x256xf32>
      %53 = vector.shape_cast %52 : vector<1x256xf32> to vector<1x1x256xf32>
      %cst_27 = arith.constant dense<0.000000e+00> : vector<1xf32>
      %54 = vector.multi_reduction <add>, %53, %cst_27 [1, 2] : vector<1x1x256xf32> to vector<1xf32>
      %55 = vector.shape_cast %54 : vector<1xf32> to vector<1x1x1xf32>
      %56 = vector.extract %55[0, 0, 0] : f32 from vector<1x1x1xf32>
      %c0_28 = arith.constant 0 : index
      %c0_29 = arith.constant 0 : index
      %57 = vector.load %arg8[%c0_28, %c0_29] : memref<1x256xf32, #tpu.memory_space<vmem>>, vector<1x256xf32>
      %58 = vector.shape_cast %57 : vector<1x256xf32> to vector<1x1x256xf32>
      %cst_30 = arith.constant dense<0.000000e+00> : vector<1xf32>
      %59 = vector.multi_reduction <add>, %58, %cst_30 [1, 2] : vector<1x1x256xf32> to vector<1xf32>
      %60 = vector.shape_cast %59 : vector<1xf32> to vector<1x1x1xf32>
      %61 = vector.extract %60[0, 0, 0] : f32 from vector<1x1x1xf32>
      %62 = tpu.iota {dimensions = array<i32: 2>} : vector<1x1x8x128xi32>
      %c0_i32_31 = arith.constant 0 : i32
      %63 = vector.broadcast %c0_i32_31 : i32 to vector<1x1x8x128xi32>
      %64 = arith.cmpi eq, %62, %63 : vector<1x1x8x128xi32>
      %c1_i32_32 = arith.constant 1 : i32
      %65 = vector.broadcast %c1_i32_32 : i32 to vector<1x1x8x128xi32>
      %66 = arith.cmpi eq, %62, %65 : vector<1x1x8x128xi32>
      %cst_33 = arith.constant 0.000000e+00 : f32
      %67 = vector.broadcast %61 : f32 to vector<1x1x8x128xf32>
      %68 = vector.broadcast %cst_33 : f32 to vector<1x1x8x128xf32>
      %69 = arith.select %66, %67, %68 : vector<1x1x8x128xi1>, vector<1x1x8x128xf32>
      %70 = vector.broadcast %56 : f32 to vector<1x1x8x128xf32>
      %71 = arith.select %64, %70, %69 : vector<1x1x8x128xi1>, vector<1x1x8x128xf32>
      %c0_34 = arith.constant 0 : index
      %c0_35 = arith.constant 0 : index
      %c0_36 = arith.constant 0 : index
      %c0_37 = arith.constant 0 : index
      %72 = vector.load %arg6[%c0_34, %c0_35, %c0_36, %c0_37] : memref<1x1x8x128xf32, #tpu.memory_space<vmem>>, vector<1x1x8x128xf32>
      tpu.vector_store %arg6[%c0_34, %c0_35, %c0_36, %c0_37], %71 {strides = array<i32>} : memref<1x1x8x128xf32, #tpu.memory_space<vmem>>, vector<1x1x8x128xf32>,
    } else {
    }
    return
  }
  func.func @transform_0(%arg0: i32, %arg1: i32, %arg2: i32) -> (i32, i32, i32) {
    %c1_i32 = arith.constant 1 : i32
    %0 = arith.muli %arg1, %c1_i32 : i32
    %1 = arith.addi %0, %arg2 : i32
    %c0_i32 = arith.constant 0 : i32
    %2 = arith.minsi %1, %c0_i32 : i32
    %c0_i32_0 = arith.constant 0 : i32
    %c0_i32_1 = arith.constant 0 : i32
    return %arg0, %c0_i32_0, %2 : i32, i32, i32
  }
  func.func @transform_1(%arg0: i32, %arg1: i32, %arg2: i32) -> (i32, i32, i32) {
    %c1_i32 = arith.constant 1 : i32
    %0 = arith.muli %arg1, %c1_i32 : i32
    %1 = arith.addi %0, %arg2 : i32
    %c0_i32 = arith.constant 0 : i32
    %2 = arith.minsi %1, %c0_i32 : i32
    %c0_i32_0 = arith.constant 0 : i32
    %c0_i32_1 = arith.constant 0 : i32
    return %arg0, %c0_i32_0, %2 : i32, i32, i32
  }
  func.func @transform_2(%arg0: i32, %arg1: i32, %arg2: i32) -> (i32, i32) {
    %c0_i32 = arith.constant 0 : i32
    %c0_i32_0 = arith.constant 0 : i32
    %c0_i32_1 = arith.constant 0 : i32
    return %c0_i32, %c0_i32_0 : i32, i32
  }
  func.func @transform_3(%arg0: i32, %arg1: i32, %arg2: i32) -> (i32, i32, i32, i32) {
    %c0_i32 = arith.constant 0 : i32
    %c0_i32_0 = arith.constant 0 : i32
    %c0_i32_1 = arith.constant 0 : i32
    return %arg0, %arg1, %c0_i32, %c0_i32_0 : i32, i32, i32, i32
  }
}

</mosaic_0001>

<bundles_post_ra>
// kernel: tpu_custom_call.1
= control target key start
LH: loop header
LB: loop body
LE: loop exit
PB: predicated region body
PF: predicated region fallthrough
CT: control target
= control target key end

     0   :  { %8 = vsyncpa [#allocation5], 0  ;;  %s1025_s0 = inlined_call_operand.vmem [shape: f32[2,10,256], index: 0, kind: input, shape index: {}]   ;;  %s1026_s1 = inlined_call_operand.vmem [shape: s32[2,1,256], index: 1, kind: input, shape index: {}]   ;;  %s1027_s2 = inlined_call_operand.vmem [shape: f32[10,1], index: 2, kind: input, shape index: {}]   ;;  %s1028_s3 = inlined_call_operand.hbm [shape: f32[2,1,8,128], index: 3, kind: output, shape index: {}]  }
   0x1   :  { %10 = vsyncpa [#allocation5 + $0x1], 0  ;;  %s835_s12 = smov 0   ;;  %s837_s13 = smov 0  }
   0x2   :  { %s839_s14 = smov 0   ;;  %s841_s15 = smov 0  }
   0x3   :  { %s843_s16 = smov 0   ;;  %s845_s17 = smov 0  }
   0x4 LB: > { %s644_s18 = sadd.s32 4294967295, %s809_s17   ;;  %s645_s19 = sadd.s32 4294967294, %s809_s17   ;;  %s809_s17 = sphi %s845_s17, %s16_s17   ;;  %s805_s16 = sphi %s843_s16, %s1037_s16   ;;  %s801_s15 = sphi %s841_s15, %s1036_s15   ;;  %s797_s14 = sphi %s839_s14, %s1035_s14   ;;  %s793_s13 = sphi %s837_s13, %s1034_s13   ;;  %s789_s12 = sphi %s835_s12, %s1033_s12  }
   0x5   : > { %s35_s20 = sadd.s32 1, %s805_s16  ;;  %s133_s21 = sadd.s32 1, %s797_s14 }
   0x6   : > { %p37_p0 = scmp.ge.s32.totalorder %s35_s20, 2  ;;  %p143_p1 = scmp.ne.s32.totalorder %s797_s14, %s793_s13 }
   0x7   : > { %p144_p2 = scmp.eq.s32.totalorder %s644_s18, 1  ;;  %p149_p3 = scmp.ne.s32.totalorder %s793_s13, %s789_s12 }
   0x8   : > { %s1039_s20 = smov (%p37_p0, %s35_s20), 0  ;;  %p150_p5 = scmp.eq.s32.totalorder %s645_s19, 1 }
   0x9   : > { %p875_p4 = por %p144_p2, %p143_p1  ;;  %s128_s23 = ssub.s32 %s805_s16, %s1039_s20 }
   0xa   : > { %p648_p6 = scmp.ge.s32.totalorder %s809_s17, 1  ;;  %p131_p7 = scmp.eq.s32.totalorder %s128_s23, 0 }
   0xb   : > { %p882_p8 = por %p150_p5, %p149_p3  ;;  %p208_p9 = scmp.lt.s32.totalorder %s809_s17, 3 }
   0xc   : > { %s888_s25 = scalar_select %p131_p7, %s797_s14, %s133_s21  }
   0xd   : > { %p209_p10 = pnand %p648_p6, %p208_p9 }
   0xe   : > { %p254_p11 = scmp.lt.s32.totalorder (!%p209_p10), %s801_s15, 1  ;;  %s247_s18 = sand.u32 (!%p209_p10), 1, %s793_s13  }
   0xf   : > { %212 = sbr.rel (%p209_p10) target bundleno = 410 (0x19a), region = 32  ;;  %s649_s19 = sshll.u32 (!%p209_p10), %s247_s18, 3 }
  0x10   : > { %s654_s21 = sshll.u32 (!%p209_p10), %s801_s15, 7  ;;  %s249_s26 = scalar_lea.vmem (!%p209_p10), [#allocation4], %s649_s19 }
  0x11   : > { %s552_s27 = sshll.u32 (!%p209_p10), %s249_s26, 4  ;;  %s814_s6 = smov (!%p209_p10), [#allocation4]   ;;  %s553_s27 = int_to_ptr.vmem [resolvable:$true] %s552_s27 }
  0x12   : > { %s733_s5 = scalar_lea.vmem (!%p209_p10), %s553_s27, 128 }
  0x13   : > { %p734_p12 = scmp.ne.s32.totalorder (!%p209_p10), %s553_s27, %s733_s5 }
  0x14   : > { %v363_v0 = vld [vmem:[%s1027_s2 + $0x8] sm:$0x3]  ;;  %v285_v1 = vlaneseq  ;;  %v811_v2 = vmov 0   ;;  %v362_v4 = vld [vmem:[%s1027_s2] sm:$0xff]  ;;  %v812_v5 = vmov 0.0   ;;  %s907_s30 = scalar_select %p254_p11, %s801_s15, 1 }
  0x15   : > { %720 = vset.pattern.permute.xlu0 %v811_v2  ;;  %vm296_vm1 = vcmask 1041408   ;;  %vm493_vm6 = vcmask 1040384   ;;  %s538_s15 = scalar_lea.sflag [#allocation5], %s247_s18  ;;  %p735_p13 = pnand %p734_p12, %p875_p4 }
  0x16   : > { %371 = vperm.xlu0 %720, %v363_v0   ;;  %vm894_vm0 = vcmp.lt.s32.totalorder %v285_v1, 256  ;;  %s657_s4 = sshll.u32 %s907_s30, 5  ;;  %s652_s8 = sshll.u32 %s907_s30, 1  ;;  %v943_v50 = vshrl.u32 %v285_v1, 7 }
  0x17   : > { %289 = vst.msk [vmem:[#allocation2] sm:$0x3] %vm894_vm0, %v812_v5  ;;  %290 = vst.msk [vmem:[#allocation3] sm:$0x3] %vm894_vm0, %v812_v5  ;;  %s261_s7 = scalar_lea.vmem %s1025_s0, %s657_s4  ;;  %s276_s11 = scalar_lea.vmem %s1026_s1, %s652_s8 }
  0x18   : > { %v913_v6 = vld [vmem:[%s261_s7 + $0x10] sm:$0x3]  ;;  %v915_v7 = vld [vmem:[%s261_s7 + $0x18] sm:$0x3]  ;;  %v917_v8 = vld [vmem:[%s261_s7] sm:$0xff]  ;;  %v949_v53 = vsub.s32 0, %v943_v50  ;;  %s985_s4 = scalar_lea.hbm %s1028_s3, %s654_s21  ;;  %p736_p0 = pneg %p735_p13 }
  0x19   : > { %v297_v9 = vsel %vm296_vm1, %v913_v6, -inf  ;;  %v921_v10 = vld [vmem:[%s261_s7 + $0x8] sm:$0xff]  ;;  %v305_v11 = vsel %vm296_vm1, %v915_v7, -inf  ;;  %v952_v54 = vsub.s32 1, %v943_v50  ;;  %v295_v56 = vld [vmem:[%s276_s11] sm:$0x3] }
  0x1a   : > { %366 = vperm.xlu0 %720, %v362_v4   ;;  %v298_v12 = vmax.f32 %v917_v8, %v297_v9  ;;  %v306_v13 = vmax.f32 %v921_v10, %v305_v11  ;;  %v349_v58 = vadd.s32 8, %v943_v50  ;;  %v353_v59 = vrot.slane %v295_v56, %v949_v53  ;;  %s737_s7 = sshll.u32 %s814_s6, 4  ;;  %s738_s7 = int_to_ptr.vmem [resolvable:$false] %s737_s7 }
  0x1b   : > { %v357_v60 = vrot.slane %v295_v56, %v952_v54  ;;  %vm531_vm7 = vcmp.eq.s32.totalorder %v943_v50, 1  ;;  %vm530_vm8 = vcmp.eq.s32.totalorder %v943_v50, 0  ;;  %s739_s8 = scalar_lea.vmem %s738_s7, 256  ;;  %p740_p1 = scmp.lt.s32.totalorder %s553_s27, %s738_s7 }
  0x1c   : > { %v299_v14 = vrot.slane %v298_v12, 4  ;;  %v307_v15 = vrot.slane %v306_v13, 4  ;;  %vm360_vm2 = vcmp.eq.s32.totalorder %v349_v58, %v353_v59  ;;  %vm358_vm4 = vcmp.eq.s32.totalorder %v943_v50, %v353_v59  ;;  %p741_p2 = scmp.lt.s32.totalorder %s739_s8, %s733_s5 }
  0x1d   : > { %vm361_vm3 = vcmp.eq.s32.totalorder %v349_v58, %v357_v60  ;;  %vm359_vm5 = vcmp.eq.s32.totalorder %v943_v50, %v357_v60 }
  0x1e   : > { %v300_v16 = vmax.f32 %v298_v12, %v299_v14  ;;  %v308_v17 = vmax.f32 %v306_v13, %v307_v15  ;;  %p742_p3 = por %p741_p2, %p740_p1 }
  0x20   : > { %v301_v18 = vrot.slane %v300_v16, 2  ;;  %v309_v19 = vrot.slane %v308_v17, 2  ;;  %p743_p5 = pnand %p742_p3, %p736_p0 }
  0x22   : > { %v302_v20 = vmax.f32 %v300_v16, %v301_v18  ;;  %v310_v21 = vmax.f32 %v308_v17, %v309_v19 }
  0x24   : > { %v303_v22 = vrot.slane %v302_v20, 1  ;;  %v311_v23 = vrot.slane %v310_v21, 1 }
  0x26   : > { %v927_v24 = vmax.f32 %v302_v20, %v303_v22  ;;  %v929_v25 = vmax.f32 %v310_v21, %v311_v23 }
  0x28   : > { %v315_v26 = vsub.f32 %v913_v6, %v927_v24  ;;  %v316_v27 = vsub.f32 %v915_v7, %v929_v25  ;;  %v313_v28 = vsub.f32 %v917_v8, %v927_v24  ;;  %v314_v29 = vsub.f32 %v921_v10, %v929_v25 }
  0x2a   : > { %v321_v30 = vmul.f32 1.442695, %v315_v26  ;;  %v323_v31 = vmul.f32 1.442695, %v316_v27  ;;  %v317_v32 = vmul.f32 1.442695, %v313_v28 }
  0x2b   : > { %v319_v33 = vmul.f32 1.442695, %v314_v29  ;;  %v813_v28 = vmov 1966171168  }
  0x2c   : > { %721 = vpow2.f32 %v321_v30  ;;  %v435_v29 = vunpack.c.l.s4 %v813_v28 }
  0x2d   : > { %723 = vpow2.f32 %v323_v31 }
  0x2e   : > { %725 = vpow2.f32 %v317_v32 }
  0x2f   : > { %727 = vpow2.f32 %v319_v33 }
  0x39   : > { %v722_v34 = vpop.eup %721 }
  0x3a   : > { %v724_v35 = vpop.eup %723  ;;  %v325_v37 = vsel %vm296_vm1, %v722_v34, 0.0 }
  0x3b   : > { %v726_v36 = vpop.eup %725  ;;  %v333_v39 = vsel %vm296_vm1, %v724_v35, 0.0 }
  0x3c   : > { %v728_v38 = vpop.eup %727  ;;  %v326_v40 = vadd.f32 %v726_v36, %v325_v37 }
  0x3d   : > { %v334_v41 = vadd.f32 %v728_v38, %v333_v39  ;;  %v436_v38 = vunpack.c.0.s8 %v435_v29 }
  0x3e   : > { %v327_v42 = vrot.slane %v326_v40, 4 }
  0x3f   : > { %v335_v43 = vrot.slane %v334_v41, 4 }
  0x40   : > { %v328_v44 = vadd.f32 %v327_v42, %v326_v40 }
  0x41   : > { %v336_v45 = vadd.f32 %v335_v43, %v334_v41 }
  0x42   : > { %v329_v46 = vrot.slane %v328_v44, 2 }
  0x43   : > { %v337_v47 = vrot.slane %v336_v45, 2 }
  0x44   : > { %v330_v48 = vadd.f32 %v329_v46, %v328_v44 }
  0x45   : > { %v338_v49 = vadd.f32 %v337_v47, %v336_v45 }
  0x46   : > { %v331_v51 = vrot.slane %v330_v48, 1 }
  0x47   : > { %v339_v52 = vrot.slane %v338_v49, 1 }
  0x48   : > { %v332_v55 = vadd.f32 %v331_v51, %v330_v48 }
  0x49   : > { %v340_v57 = vadd.f32 %v339_v52, %v338_v49  ;;  %v439_v49 = vsub.s32 %v436_v38, %v943_v50 }
  0x4a   : > { %729 = vlog2.f32 %v332_v55 }
  0x4b   : > { %731 = vlog2.f32 %v340_v57 }
  0x57   : > { %v730_v16 = vpop.eup %729 }
  0x58   : > { %v732_v18 = vpop.eup %731  ;;  %v342_v30 = vmul.f32 0.6931472, %v730_v16 }
  0x5a   : > { %v345_v39 = vadd.f32 %v342_v30, %v927_v24 }
  0x91   : > { %v372_v61 = vpop.permute.xlu0 %371 }
  0x92   : > { %v376_v62 = vsel %vm360_vm2, %v372_v61, 0.0  ;;  %v377_v63 = vsel %vm361_vm3, %v372_v61, 0.0 }
  0x93   : > { %v396_v0 = vmul.f32 %v376_v62, %v913_v6  ;;  %v397_v1 = vmul.f32 %v377_v63, %v915_v7  ;;  %v378_v9 = vsel %vm296_vm1, %v376_v62, 0.0  ;;  %v386_v11 = vsel %vm296_vm1, %v377_v63, 0.0  ;;  %v424_v63 = vld [vmem:[#allocation2] sm:$0x3] }
  0x95   : > { %v367_v2 = vpop.permute.xlu0 %366  ;;  %v398_v17 = vsel %vm296_vm1, %v396_v0, 0.0  ;;  %v406_v6 = vsel %vm296_vm1, %v397_v1, 0.0 }
  0x96   : > { %v374_v4 = vsel %vm358_vm4, %v367_v2, 0.0  ;;  %v375_v5 = vsel %vm359_vm5, %v367_v2, 0.0 }
  0x97   : > { %v379_v12 = vadd.f32 %v378_v9, %v374_v4  ;;  %v387_v13 = vadd.f32 %v386_v11, %v375_v5  ;;  %v394_v14 = vmul.f32 %v374_v4, %v917_v8  ;;  %v395_v15 = vmul.f32 %v375_v5, %v921_v10 }
  0x98   : > { %v344_v8 = vmul.f32 0.6931472, %v732_v18 }
  0x99   : > { %v380_v7 = vrot.slane %v379_v12, 4  ;;  %v388_v19 = vrot.slane %v387_v13, 4  ;;  %v399_v20 = vadd.f32 %v398_v17, %v394_v14  ;;  %v407_v21 = vadd.f32 %v406_v6, %v395_v15 }
  0x9a   : > { %v346_v40 = vadd.f32 %v344_v8, %v929_v25  ;;  %v455_v25 = vld [vmem:[#allocation3] sm:$0x3] }
  0x9b   : > { %v381_v22 = vadd.f32 %v380_v7, %v379_v12  ;;  %v389_v23 = vadd.f32 %v388_v19, %v387_v13  ;;  %v400_v26 = vrot.slane %v399_v20, 4  ;;  %v408_v27 = vrot.slane %v407_v21, 4 }
  0x9d   : > { %v382_v31 = vrot.slane %v381_v22, 2  ;;  %v390_v10 = vrot.slane %v389_v23, 2  ;;  %v401_v32 = vadd.f32 %v400_v26, %v399_v20  ;;  %v409_v33 = vadd.f32 %v408_v27, %v407_v21 }
  0x9f   : > { %v383_v34 = vadd.f32 %v382_v31, %v381_v22  ;;  %v391_v35 = vadd.f32 %v390_v10, %v389_v23  ;;  %v402_v36 = vrot.slane %v401_v32, 2  ;;  %v410_v37 = vrot.slane %v409_v33, 2 }
  0xa1   : > { %v384_v41 = vrot.slane %v383_v34, 1  ;;  %v392_v42 = vrot.slane %v391_v35, 1  ;;  %v403_v43 = vadd.f32 %v402_v36, %v401_v32  ;;  %v411_v44 = vadd.f32 %v410_v37, %v409_v33 }
  0xa3   : > { %v385_v45 = vadd.f32 %v384_v41, %v383_v34  ;;  %v393_v46 = vadd.f32 %v392_v42, %v391_v35  ;;  %v404_v47 = vrot.slane %v403_v43, 1  ;;  %v412_v48 = vrot.slane %v411_v44, 1 }
  0xa5   : > { %v405_v51 = vadd.f32 %v404_v47, %v403_v43  ;;  %v413_v52 = vadd.f32 %v412_v48, %v411_v44  ;;  %v425_v55 = vmul.f32 %v385_v45, %v345_v39  ;;  %v426_v56 = vmul.f32 %v393_v46, %v346_v40 }
  0xa6   : > { %v460_v57 = vcombine.low %v385_v45, %v393_v46 }
  0xa7   : > { %v427_v58 = vsub.f32 %v425_v55, %v405_v51  ;;  %v428_v59 = vsub.f32 %v426_v56, %v413_v52 }
  0xa8   : > { %v467_v24 = vrot.slane %v460_v57, %v439_v49 }
  0xa9   : > { %v433_v60 = vcombine.low %v427_v58, %v428_v59 }
  0xaa   : > { %v474_v61 = vrot.slane %v467_v24, %v439_v49 }
  0xab   : > { %v440_v62 = vrot.slane %v433_v60, %v439_v49 }
  0xac   : > { %v476_v0 = vadd.f32 %v474_v61, %v455_v25 }
  0xad   : > { %v447_v1 = vrot.slane %v440_v62, %v439_v49 }
  0xae   : > { %477 = vst.msk [vmem:[#allocation3] sm:$0x3] %vm894_vm0, %v476_v0 }
  0xaf   : > { %v449_v2 = vadd.f32 %v447_v1, %v424_v63 }
  0xb1   : > { %454 = vst.msk [vmem:[#allocation2] sm:$0x3] %vm894_vm0, %v449_v2 }
  0xb5   : > { %v506_v4 = vld [vmem:[#allocation3] sm:$0x3] }
  0xb6   : > { %v511_v12 = vrot.slane %v506_v4, %v949_v53  ;;  %v515_v13 = vrot.slane %v506_v4, %v952_v54 }
  0xb8   : > { %v481_v5 = vld [vmem:[#allocation2] sm:$0x3]  ;;  %v518_v17 = vsel %vm493_vm6, %v511_v12, 0.0  ;;  %v519_v6 = vsel %vm493_vm6, %v515_v13, 0.0 }
  0xb9   : > { %v486_v9 = vrot.slane %v481_v5, %v949_v53  ;;  %v490_v11 = vrot.slane %v481_v5, %v952_v54  ;;  %v520_v18 = vadd.f32 %v519_v6, %v518_v17 }
  0xbb   : > { %v494_v14 = vsel %vm493_vm6, %v486_v9, 0.0  ;;  %v495_v15 = vsel %vm493_vm6, %v490_v11, 0.0 }
  0xbc   : > { %v496_v16 = vadd.f32 %v495_v15, %v494_v14 }
  0xbe   : > { %497 = vadd.xlane.f32.xlu1 %v496_v16 }
  0xc2   : > { %521 = vadd.xlane.f32.xlu1 %v520_v18 }
 0x147   : > { %v498_v3 = vpop.xlane.xlu1 %497 }
 0x148   : > { %v499_v7 = vrot.slane %v498_v3, 4 }
 0x14a   : > { %v500_v19 = vadd.f32 %v499_v7, %v498_v3 }
 0x14b   : > { %v522_v20 = vpop.xlane.xlu1 %521 }
 0x14c   : > { %v501_v21 = vrot.slane %v500_v19, 2  ;;  %v523_v22 = vrot.slane %v522_v20, 4 }
 0x14e   : > { %v524_v53 = vadd.f32 %v523_v22, %v522_v20  ;;  %v502_v23 = vadd.f32 %v501_v21, %v500_v19 }
 0x150   : > { %v525_v54 = vrot.slane %v524_v53, 2  ;;  %v503_v26 = vrot.slane %v502_v23, 1 }
 0x152   : > { %v526_v27 = vadd.f32 %v525_v54, %v524_v53  ;;  %v504_v28 = vadd.f32 %v503_v26, %v502_v23 }
 0x154   : > { %658 = vpush %v504_v28  ;;  %v527_v29 = vrot.slane %v526_v27, 1 }
 0x156   : > { %v528_v30 = vadd.f32 %v527_v29, %v526_v27 }
 0x158   : > { %660 = vpush %v528_v30 }
 0x185   : > { %s659_s23 = spop %658 }
 0x186   : > { %v534_v31 = vstv %s659_s23 }
 0x189   : > { %s661_s28 = spop %660 }
 0x18a   : > { %v532_v8 = vstv %s661_s28 }
 0x18b   : > { %v533_v10 = vsel %vm531_vm7, %v532_v8, 0.0 }
 0x18c   : > { %v535_v32 = vsel %vm530_vm8, %v534_v31, %v533_v10 }
 0x18d   : > { %536 = vst [vmem:[%s249_s26] sm:$0xff] %v535_v32 }
 0x18e   : > { %746 = shalt.err (!%p743_p5)
}
 0x18f   : > { %s747_s9 = scalar_lea.hbm %s985_s4, 128  ;;  %s751_s18 = scalar_lea.hbm %s1028_s3, 256 }
 0x190   : > { %p748_p6 = scmp.ne.s32.totalorder %s985_s4, %s747_s9  ;;  %p752_p10 = scmp.lt.s32.totalorder %s985_s4, %s1028_s3 }
 0x191   : > { %p753_p11 = scmp.lt.s32.totalorder %s751_s18, %s747_s9 }
 0x192   : > { %p749_p7 = pnand %p748_p6, %p875_p4 }
 0x193   : > { %p754_p12 = por %p753_p11, %p752_p10 }
 0x194   : > { %p750_p9 = pneg %p749_p7 }
 0x196   : > { %p755_p13 = pnand %p754_p12, %p750_p9 }
 0x198   : > { %758 = shalt.err (!%p755_p13)
}
 0x199   : > { %662 = dma.vmem_to_hbm [thread:$0]  (%p875_p4), %s553_s27, 128, %s985_s4, %s538_s15  }
 0x19a PF: > { %p668_p0 = scmp.ge.s32.totalorder %s809_s17, 2  ;;  %s564_s23 = sand.u32 1, %s789_s12  }
 0x19b   : > { %s565_s26 = scalar_lea.sflag [#allocation5], %s564_s23 }
 0x19c   : > { %p665_p1 = pnand %p668_p0, %p882_p8 }
 0x19e   : > { %p666_p2 = pneg %p665_p1 }
 0x1a0   : > { %784 = dma.done.wait (%p666_p2), %s565_s26, 128  }
 0x1a1   : > { %786 = vsyncadd (%p666_p2), %s565_s26, 4294967168  ;;  %s16_s17 = sadd.s32 1, %s809_s17   ;;  %s1033_s12 = smov %s793_s13 }
 0x1a2   : > { %p13_p3 = scmp.ge.s32.totalorder %s16_s17, 4   ;;  %s1034_s13 = smov %s797_s14 }
 0x1a3   : > { %s1035_s14 = smov %s888_s25  ;;  %s1036_s15 = smov %s805_s16 }
 0x1a4   : > { %s1037_s16 = smov %s1039_s20  ;;  %15 = sbr.rel (!%p13_p3) target bundleno = 4 (0x4), region = 78 }
 0x1a9   :  { %570 = vsyncpa [#allocation5], 1 }
 0x1aa   :  { %572 = vsyncpa [#allocation5 + $0x1], 1 }

</bundles_post_ra>
